<compile_context>
chip_gen: v5e
topology: v5e:2x2
jax: 0.10.0
libtpu: 0.0.40
codegen_flags: <defaults>
</compile_context>

<pallas_src>
import functools

import jax
import jax.numpy as jnp
from jax.experimental import pallas as pl
from jax.experimental.pallas import tpu as pltpu


LANE = 128


def _round_up(x, m):
    return ((x + m - 1) // m) * m


def _mlp_kernel(x_ref,
                w1_ref, b1_ref,
                w2_ref, b2_ref,
                w3_ref, b3_ref,
                w4_ref, b4_ref,
                o_ref):
    # Layer 1: (TM, 512) @ (512, 256) + b1, ReLU
    h1 = jnp.dot(x_ref[...], w1_ref[...],
                 preferred_element_type=jnp.float32) + b1_ref[...]
    h1 = jnp.maximum(h1, 0.0).astype(jnp.bfloat16)

    # Layer 2: (TM, 256) @ (256, 128) + b2, ReLU
    h2 = jnp.dot(h1, w2_ref[...],
                 preferred_element_type=jnp.float32) + b2_ref[...]
    h2 = jnp.maximum(h2, 0.0).astype(jnp.bfloat16)

    # Layer 3: (TM, 128) @ (128, 128) + b3, ReLU
    h3 = jnp.dot(h2, w3_ref[...],
                 preferred_element_type=jnp.float32) + b3_ref[...]
    h3 = jnp.maximum(h3, 0.0).astype(jnp.bfloat16)

    # Head: (TM, 128) @ (128, 128-padded) + b4, no activation (lane-dense store)
    out = jnp.dot(h3, w4_ref[...],
                  preferred_element_type=jnp.float32) + b4_ref[...]
    o_ref[...] = out.astype(o_ref.dtype)


def goal_cond_grid_net_forward(x1, x2, params, n_out, *, tile_m=128):
    """x1, x2: (B, h, w) float32.  params: bf16 weights (in, out) + f32 biases.

    Returns (B, n_out) float32, matching the PyTorch forward semantics.
    """
    B = x1.shape[0]
    # Concat + bf16 cast done once in XLA (tiny: B x 512).
    x = jnp.concatenate([x1.reshape(B, -1), x2.reshape(B, -1)],
                        axis=-1).astype(jnp.bfloat16)
    K = x.shape[1]

    w1, b1 = params["w1"], params["b1"]
    w2, b2 = params["w2"], params["b2"]
    w3, b3 = params["w3"], params["b3"]
    w4, b4 = params["w4"], params["b4"]          # already lane-padded to 128
    n_out_pad = w4.shape[1]

    # Batch tiling: tile of TM rows (multiple of 8), pad batch to a multiple.
    tm = min(tile_m, _round_up(B, 8))
    b_pad = _round_up(B, tm)
    if b_pad != B:
        x = jnp.pad(x, ((0, b_pad - B), (0, 0)))
    grid = (b_pad // tm,)

    def batch_map(i):
        return (i, 0)

    def const_map(i):
        return (0, 0)

    full_spec = lambda arr: pl.BlockSpec(arr.shape, const_map)

    out = pl.pallas_call(
        _mlp_kernel,
        out_shape=jax.ShapeDtypeStruct((b_pad, n_out_pad), jnp.float32),
        grid_spec=pltpu.PrefetchScalarGridSpec(
            num_scalar_prefetch=0,
            grid=grid,
            in_specs=[
                pl.BlockSpec((tm, K), batch_map),
                full_spec(w1), full_spec(b1),
                full_spec(w2), full_spec(b2),
                full_spec(w3), full_spec(b3),
                full_spec(w4), full_spec(b4),
            ],
            out_specs=pl.BlockSpec((tm, n_out_pad), batch_map),
        ),
        compiler_params=pltpu.CompilerParams(
            dimension_semantics=("parallel",)),
    )(x, w1, b1, w2, b2, w3, b3, w4, b4)

    return out[:B, :n_out]


def init_params(key, h, w, n_out):
    """Deterministic init mimicking nn.Linear default (uniform +/- 1/sqrt(fan_in)).

    Weights are stored (in_features, out_features) in bfloat16; biases stay
    f32 with shape (1, out).  The head weight/bias are zero-padded to 128
    output lanes for a lane-dense store.
    """
    hw = h * w
    dims = [(2 * hw, 256), (256, 128), (128, 128), (128, n_out)]
    keys = jax.random.split(key, 2 * len(dims))
    ws, bs = [], []
    for i, (fan_in, fan_out) in enumerate(dims):
        bound = 1.0 / (fan_in ** 0.5)
        w_ = jax.random.uniform(keys[2 * i], (fan_in, fan_out),
                                minval=-bound, maxval=bound, dtype=jnp.float32)
        b_ = jax.random.uniform(keys[2 * i + 1], (1, fan_out),
                                minval=-bound, maxval=bound, dtype=jnp.float32)
        ws.append(w_)
        bs.append(b_)

    n_out_pad = _round_up(max(n_out, 1), LANE)
    w4 = jnp.pad(ws[3], ((0, 0), (0, n_out_pad - n_out)))
    b4 = jnp.pad(bs[3], ((0, 0), (0, n_out_pad - n_out)))

    return {
        "w1": ws[0].astype(jnp.bfloat16), "b1": bs[0],
        "w2": ws[1].astype(jnp.bfloat16), "b2": bs[1],
        "w3": ws[2].astype(jnp.bfloat16), "b3": bs[2],
        "w4": w4.astype(jnp.bfloat16), "b4": b4,
    }


def reference_forward(x1, x2, params, n_out):
    """Pure-JAX reference using the same bf16 weights / f32 accumulation path."""
    B = x1.shape[0]
    x = jnp.concatenate([x1.reshape(B, -1), x2.reshape(B, -1)],
                        axis=-1).astype(jnp.bfloat16)

    def dense_relu(h, w_, b_):
        y = jnp.dot(h, w_, preferred_element_type=jnp.float32) + b_
        return jnp.maximum(y, 0.0).astype(jnp.bfloat16)

    h = dense_relu(x, params["w1"], params["b1"])
    h = dense_relu(h, params["w2"], params["b2"])
    h = dense_relu(h, params["w3"], params["b3"])
    out = jnp.dot(h, params["w4"],
                  preferred_element_type=jnp.float32) + params["b4"]
    return out[:, :n_out]


if __name__ == "__main__":
    H, W, N_OUT = 16, 16, 8
    B = 8

    key = jax.random.PRNGKey(0)
    k_x1, k_x2, k_p = jax.random.split(key, 3)
    x1 = jax.random.normal(k_x1, (B, H, W), dtype=jnp.float32)
    x2 = jax.random.normal(k_x2, (B, H, W), dtype=jnp.float32)
    params = init_params(k_p, H, W, N_OUT)

    out = goal_cond_grid_net_forward(x1, x2, params, N_OUT)
    out = jax.block_until_ready(out)

    ref = reference_forward(x1, x2, params, N_OUT)
    assert out.shape == (B, N_OUT)
    assert jnp.allclose(out, ref, atol=1e-2, rtol=1e-2), "mismatch vs reference"

    print("KERNEL_OK")
</pallas_src>

<mosaic_0001>
module attributes {stable_mosaic.version = 11 : i64} {
  func.func @_mlp_kernel(%arg0: i32, %arg1: memref<8x512xbf16, #tpu.memory_space<vmem>>, %arg2: memref<512x256xbf16, #tpu.memory_space<vmem>>, %arg3: memref<1x256xf32, #tpu.memory_space<vmem>>, %arg4: memref<256x128xbf16, #tpu.memory_space<vmem>>, %arg5: memref<1x128xf32, #tpu.memory_space<vmem>>, %arg6: memref<128x128xbf16, #tpu.memory_space<vmem>>, %arg7: memref<1x128xf32, #tpu.memory_space<vmem>>, %arg8: memref<128x128xbf16, #tpu.memory_space<vmem>>, %arg9: memref<1x128xf32, #tpu.memory_space<vmem>>, %arg10: memref<8x128xf32, #tpu.memory_space<vmem>>) attributes {dimension_semantics = [#tpu.dimension_semantics<parallel>], iteration_bounds = array<i64: 1>, scalar_prefetch = 0 : i64, scratch_operands = 0 : i64, tpu.core_type = #tpu.core_type<tc>, window_params = [{transform_indices = @transform_0, window_bounds = array<i64: 8, 512>}, {pipeline_mode = #tpu.pipeline_mode<synchronous>, transform_indices = @transform_1, window_bounds = array<i64: 512, 256>}, {pipeline_mode = #tpu.pipeline_mode<synchronous>, transform_indices = @transform_2, window_bounds = array<i64: 1, 256>}, {pipeline_mode = #tpu.pipeline_mode<synchronous>, transform_indices = @transform_3, window_bounds = array<i64: 256, 128>}, {pipeline_mode = #tpu.pipeline_mode<synchronous>, transform_indices = @transform_4, window_bounds = array<i64: 1, 128>}, {pipeline_mode = #tpu.pipeline_mode<synchronous>, transform_indices = @transform_5, window_bounds = array<i64: 128, 128>}, {pipeline_mode = #tpu.pipeline_mode<synchronous>, transform_indices = @transform_6, window_bounds = array<i64: 1, 128>}, {pipeline_mode = #tpu.pipeline_mode<synchronous>, transform_indices = @transform_7, window_bounds = array<i64: 128, 128>}, {pipeline_mode = #tpu.pipeline_mode<synchronous>, transform_indices = @transform_8, window_bounds = array<i64: 1, 128>}, {transform_indices = @transform_9, window_bounds = array<i64: 8, 128>}]} {
    %c0 = arith.constant 0 : index
    %c0_0 = arith.constant 0 : index
    %0 = vector.load %arg1[%c0, %c0_0] : memref<8x512xbf16, #tpu.memory_space<vmem>>, vector<8x512xbf16>
    %c0_1 = arith.constant 0 : index
    %c0_2 = arith.constant 0 : index
    %1 = vector.load %arg2[%c0_1, %c0_2] : memref<512x256xbf16, #tpu.memory_space<vmem>>, vector<512x256xbf16>
    %cst = arith.constant dense<0.000000e+00> : vector<8x256xf32>
    %2 = tpu.matmul %0, %1, %cst {dimension_numbers = #tpu.dot_dimension_numbers<[1], [0], [0], [1], [0, 0, 1, 1], [], []>} : vector<8x512xbf16>, vector<512x256xbf16>, vector<8x256xf32> -> vector<8x256xf32>
    %c0_3 = arith.constant 0 : index
    %c0_4 = arith.constant 0 : index
    %3 = vector.load %arg3[%c0_3, %c0_4] : memref<1x256xf32, #tpu.memory_space<vmem>>, vector<1x256xf32>
    %4 = vector.broadcast %3 : vector<1x256xf32> to vector<8x256xf32>
    %5 = arith.addf %2, %4 : vector<8x256xf32>
    %cst_5 = arith.constant 0.000000e+00 : f32
    %6 = vector.broadcast %cst_5 : f32 to vector<8x256xf32>
    %7 = arith.maximumf %5, %6 : vector<8x256xf32>
    %8 = arith.truncf %7 : vector<8x256xf32> to vector<8x256xbf16>
    %c0_6 = arith.constant 0 : index
    %c0_7 = arith.constant 0 : index
    %9 = vector.load %arg4[%c0_6, %c0_7] : memref<256x128xbf16, #tpu.memory_space<vmem>>, vector<256x128xbf16>
    %cst_8 = arith.constant dense<0.000000e+00> : vector<8x128xf32>
    %10 = tpu.matmul %8, %9, %cst_8 {dimension_numbers = #tpu.dot_dimension_numbers<[1], [0], [0], [1], [0, 0, 1, 1], [], []>} : vector<8x256xbf16>, vector<256x128xbf16>, vector<8x128xf32> -> vector<8x128xf32>
    %c0_9 = arith.constant 0 : index
    %c0_10 = arith.constant 0 : index
    %11 = vector.load %arg5[%c0_9, %c0_10] : memref<1x128xf32, #tpu.memory_space<vmem>>, vector<1x128xf32>
    %12 = vector.broadcast %11 : vector<1x128xf32> to vector<8x128xf32>
    %13 = arith.addf %10, %12 : vector<8x128xf32>
    %cst_11 = arith.constant 0.000000e+00 : f32
    %14 = vector.broadcast %cst_11 : f32 to vector<8x128xf32>
    %15 = arith.maximumf %13, %14 : vector<8x128xf32>
    %16 = arith.truncf %15 : vector<8x128xf32> to vector<8x128xbf16>
    %c0_12 = arith.constant 0 : index
    %c0_13 = arith.constant 0 : index
    %17 = vector.load %arg6[%c0_12, %c0_13] : memref<128x128xbf16, #tpu.memory_space<vmem>>, vector<128x128xbf16>
    %cst_14 = arith.constant dense<0.000000e+00> : vector<8x128xf32>
    %18 = tpu.matmul %16, %17, %cst_14 {dimension_numbers = #tpu.dot_dimension_numbers<[1], [0], [0], [1], [0, 0, 1, 1], [], []>} : vector<8x128xbf16>, vector<128x128xbf16>, vector<8x128xf32> -> vector<8x128xf32>
    %c0_15 = arith.constant 0 : index
    %c0_16 = arith.constant 0 : index
    %19 = vector.load %arg7[%c0_15, %c0_16] : memref<1x128xf32, #tpu.memory_space<vmem>>, vector<1x128xf32>
    %20 = vector.broadcast %19 : vector<1x128xf32> to vector<8x128xf32>
    %21 = arith.addf %18, %20 : vector<8x128xf32>
    %cst_17 = arith.constant 0.000000e+00 : f32
    %22 = vector.broadcast %cst_17 : f32 to vector<8x128xf32>
    %23 = arith.maximumf %21, %22 : vector<8x128xf32>
    %24 = arith.truncf %23 : vector<8x128xf32> to vector<8x128xbf16>
    %c0_18 = arith.constant 0 : index
    %c0_19 = arith.constant 0 : index
    %25 = vector.load %arg8[%c0_18, %c0_19] : memref<128x128xbf16, #tpu.memory_space<vmem>>, vector<128x128xbf16>
    %cst_20 = arith.constant dense<0.000000e+00> : vector<8x128xf32>
    %26 = tpu.matmul %24, %25, %cst_20 {dimension_numbers = #tpu.dot_dimension_numbers<[1], [0], [0], [1], [0, 0, 1, 1], [], []>} : vector<8x128xbf16>, vector<128x128xbf16>, vector<8x128xf32> -> vector<8x128xf32>
    %c0_21 = arith.constant 0 : index
    %c0_22 = arith.constant 0 : index
    %27 = vector.load %arg9[%c0_21, %c0_22] : memref<1x128xf32, #tpu.memory_space<vmem>>, vector<1x128xf32>
    %28 = vector.broadcast %27 : vector<1x128xf32> to vector<8x128xf32>
    %29 = arith.addf %26, %28 : vector<8x128xf32>
    %c0_23 = arith.constant 0 : index
    %c0_24 = arith.constant 0 : index
    %30 = vector.load %arg10[%c0_23, %c0_24] : memref<8x128xf32, #tpu.memory_space<vmem>>, vector<8x128xf32>
    tpu.vector_store %arg10[%c0_23, %c0_24], %29 {strides = array<i32>} : memref<8x128xf32, #tpu.memory_space<vmem>>, vector<8x128xf32>,
    return
  }
  func.func @transform_0(%arg0: i32) -> (i32, i32) {
    %c0_i32 = arith.constant 0 : i32
    %c0_i32_0 = arith.constant 0 : i32
    return %arg0, %c0_i32 : i32, i32
  }
  func.func @transform_1(%arg0: i32) -> (i32, i32) {
    %c0_i32 = arith.constant 0 : i32
    %c0_i32_0 = arith.constant 0 : i32
    %c0_i32_1 = arith.constant 0 : i32
    return %c0_i32, %c0_i32_0 : i32, i32
  }
  func.func @transform_2(%arg0: i32) -> (i32, i32) {
    %c0_i32 = arith.constant 0 : i32
    %c0_i32_0 = arith.constant 0 : i32
    %c0_i32_1 = arith.constant 0 : i32
    return %c0_i32, %c0_i32_0 : i32, i32
  }
  func.func @transform_3(%arg0: i32) -> (i32, i32) {
    %c0_i32 = arith.constant 0 : i32
    %c0_i32_0 = arith.constant 0 : i32
    %c0_i32_1 = arith.constant 0 : i32
    return %c0_i32, %c0_i32_0 : i32, i32
  }
  func.func @transform_4(%arg0: i32) -> (i32, i32) {
    %c0_i32 = arith.constant 0 : i32
    %c0_i32_0 = arith.constant 0 : i32
    %c0_i32_1 = arith.constant 0 : i32
    return %c0_i32, %c0_i32_0 : i32, i32
  }
  func.func @transform_5(%arg0: i32) -> (i32, i32) {
    %c0_i32 = arith.constant 0 : i32
    %c0_i32_0 = arith.constant 0 : i32
    %c0_i32_1 = arith.constant 0 : i32
    return %c0_i32, %c0_i32_0 : i32, i32
  }
  func.func @transform_6(%arg0: i32) -> (i32, i32) {
    %c0_i32 = arith.constant 0 : i32
    %c0_i32_0 = arith.constant 0 : i32
    %c0_i32_1 = arith.constant 0 : i32
    return %c0_i32, %c0_i32_0 : i32, i32
  }
  func.func @transform_7(%arg0: i32) -> (i32, i32) {
    %c0_i32 = arith.constant 0 : i32
    %c0_i32_0 = arith.constant 0 : i32
    %c0_i32_1 = arith.constant 0 : i32
    return %c0_i32, %c0_i32_0 : i32, i32
  }
  func.func @transform_8(%arg0: i32) -> (i32, i32) {
    %c0_i32 = arith.constant 0 : i32
    %c0_i32_0 = arith.constant 0 : i32
    %c0_i32_1 = arith.constant 0 : i32
    return %c0_i32, %c0_i32_0 : i32, i32
  }
  func.func @transform_9(%arg0: i32) -> (i32, i32) {
    %c0_i32 = arith.constant 0 : i32
    %c0_i32_0 = arith.constant 0 : i32
    return %arg0, %c0_i32 : i32, i32
  }
}

</mosaic_0001>

<bundles_post_ra>
// kernel: tpu_custom_call.1
= control target key start
LH: loop header
LB: loop body
LE: loop exit
PB: predicated region body
PF: predicated region fallthrough
CT: control target
= control target key end

     0   :  { %14 = vsyncpa [#allocation3], 0  ;;  %s1761_s0 = inlined_call_operand.hbm [shape: bf16[8,512], index: 0, kind: input, shape index: {}]   ;;  %s1762_s1 = inlined_call_operand.hbm [shape: bf16[512,256], index: 1, kind: input, shape index: {}]   ;;  %s1763_s2 = inlined_call_operand.hbm [shape: f32[1,256], index: 2, kind: input, shape index: {}]   ;;  %s1764_s3 = inlined_call_operand.hbm [shape: bf16[256,128], index: 3, kind: input, shape index: {}]   ;;  %s1765_s4 = inlined_call_operand.vmem [shape: f32[1,128], index: 4, kind: input, shape index: {}]   ;;  %s1766_s5 = inlined_call_operand.hbm [shape: bf16[128,128], index: 5, kind: input, shape index: {}]   ;;  %s1767_s6 = inlined_call_operand.vmem [shape: f32[1,128], index: 6, kind: input, shape index: {}]   ;;  %s1768_s7 = inlined_call_operand.hbm [shape: bf16[128,128], index: 7, kind: input, shape index: {}]   ;;  %s1769_s8 = inlined_call_operand.vmem [shape: f32[1,128], index: 8, kind: input, shape index: {}]   ;;  %s1770_s9 = inlined_call_operand.hbm [shape: f32[8,128], index: 9, kind: output, shape index: {}]  }
   0x1   :  { %15 = vsyncpa [#allocation6], 0 }
   0x2   :  { %16 = vsyncpa [#allocation9], 0 }
   0x3   :  { %17 = vsyncpa [#allocation12], 0  ;;  %s34_s11 = sshll.u32 %s1762_s1, 4  ;;  %s35_s11 = int_to_ptr.hbm [resolvable:$true] %s34_s11 }
   0x4   :  { %18 = vsyncpa [#allocation4], 0  ;;  %s1654_s12 = smov [#allocation5]   ;;  %s58_s16 = sshll.u32 %s1764_s3, 4  ;;  %s59_s16 = int_to_ptr.hbm [resolvable:$true] %s58_s16 }
   0x5   :  { %s36_s13 = sshll.u32 %s1654_s12, 4  ;;  %s1655_s17 = smov 128   ;;  %s37_s13 = int_to_ptr.vmem [resolvable:$true] %s36_s13 }
   0x6   :  { %s1656_s18 = smov 8   ;;  %s1657_s19 = smov [#allocation8]  }
   0x7   :  { %42 = dma.hbm_to_vmem [thread:$0]  %s35_s11, 8192, %s37_s13, [#allocation6], %s1655_s17, %s1655_s17, %s1656_s18  }
   0x8   :  { %s60_s20 = sshll.u32 %s1657_s19, 4  ;;  %s1658_s21 = smov 64   ;;  %s61_s20 = int_to_ptr.vmem [resolvable:$true] %s60_s20 }
   0x9   :  { %s1659_s22 = smov 4   ;;  %s24_s24 = sshll.u32 %s1761_s0, 4  ;;  %s25_s24 = int_to_ptr.hbm [resolvable:$true] %s24_s24 }
   0xa   :  { %66 = dma.hbm_to_vmem [thread:$0]  %s59_s16, 2048, %s61_s20, [#allocation9], %s1658_s21, %s1658_s21, %s1659_s22  }
   0xb   :  { %s1660_s25 = smov [#allocation2]   ;;  %s48_s28 = sshll.u32 %s1763_s2, 4  ;;  %s49_s28 = int_to_ptr.hbm [resolvable:$true] %s48_s28 }
   0xc   :  { %s26_s26 = sshll.u32 %s1660_s25, 4  ;;  %s1661_s29 = smov [#allocation7]   ;;  %s27_s26 = int_to_ptr.vmem [resolvable:$true] %s26_s26 }
   0xd   :  { %29 = dma.hbm_to_vmem [thread:$0]  %s25_s24, 256, %s27_s26, [#allocation3]  }
   0xe   :  { %s50_s30 = sshll.u32 %s1661_s29, 4  ;;  %s73_s12 = sshll.u32 %s1766_s5, 4  ;;  %s51_s30 = int_to_ptr.vmem [resolvable:$true] %s50_s30  ;;  %s74_s12 = int_to_ptr.hbm [resolvable:$true] %s73_s12 }
   0xf   :  { %53 = dma.hbm_to_vmem [thread:$0]  %s49_s28, 32, %s51_s30, [#allocation6]  }
  0x10   :  { %s88_s14 = sshll.u32 %s1768_s7, 4  ;;  %s1662_s15 = smov [#allocation10]   ;;  %s89_s14 = int_to_ptr.hbm [resolvable:$true] %s88_s14 }
  0x11   :  { %s75_s16 = sshll.u32 %s1662_s15, 4  ;;  %s1663_s2 = smov [#allocation11]   ;;  %s76_s16 = int_to_ptr.vmem [resolvable:$true] %s75_s16 }
  0x12   :  { %81 = dma.hbm_to_vmem [thread:$0]  %s74_s12, 1024, %s76_s16, [#allocation9], %s1658_s21, %s1658_s21, %s1659_s22  }
  0x13   :  { %s90_s17 = sshll.u32 %s1663_s2, 4  ;;  %s91_s17 = int_to_ptr.vmem [resolvable:$true] %s90_s17 }
  0x14   :  { %96 = dma.hbm_to_vmem [thread:$0]  %s89_s14, 1024, %s91_s17, [#allocation12], %s1658_s21, %s1658_s21, %s1659_s22  }
  0x15   :  { %1644 = dma.done.wait [#allocation3], 256  }
  0x16   :  { %1645 = vsyncadd [#allocation3], 4294967040 }
  0x17   :  { %1646 = dma.done.wait [#allocation6], 8224  }
  0x18   :  { %1647 = vsyncadd [#allocation6], 4294959072 }
  0x19   :  { %1648 = dma.done.wait [#allocation9], 3072  }
  0x1a   :  { %1649 = vsyncadd [#allocation9], 4294964224 }
  0x1b   :  { %1650 = dma.done.wait [#allocation12], 1024  }
  0x1c   :  { %1651 = vsyncadd [#allocation12], 4294966272  ;;  %v1040_v0 = vld [vmem:[#allocation5 + $0x70] sm:$0xf]  ;;  %v1381_v1 = vld [vmem:[#allocation5 + $0x74] sm:$0xf0] }
  0x1d   :  { %v1104_v2 = vld [vmem:[#allocation5 + $0xf0] sm:$0xf]  ;;  %v1041_v3 = vor.u32 %v1381_v1, %v1040_v0  ;;  %v1397_v4 = vld [vmem:[#allocation5 + $0xf4] sm:$0xf0]  ;;  %v1032_v11 = vld [vmem:[#allocation5 + $0x60] sm:$0xf] }
  0x1e   :  { %v1168_v5 = vld [vmem:[#allocation5 + $0x170] sm:$0xf]  ;;  %v1413_v6 = vld [vmem:[#allocation5 + $0x174] sm:$0xf0]  ;;  %v1105_v7 = vor.u32 %v1397_v4, %v1104_v2  ;;  %v1379_v13 = vld [vmem:[#allocation5 + $0x64] sm:$0xf0] }
  0x1f   :  { %v1169_v8 = vor.u32 %v1413_v6, %v1168_v5  ;;  %v1232_v9 = vld [vmem:[#allocation5 + $0x1f0] sm:$0xf]  ;;  %v1429_v10 = vld [vmem:[#allocation5 + $0x1f4] sm:$0xf0]  ;;  %529 = vmatpush.bf16.msra.mxu0 %v1041_v3  ;;  %v1096_v14 = vld [vmem:[#allocation5 + $0xe0] sm:$0xf]  ;;  %v1033_v16 = vor.u32 %v1379_v13, %v1032_v11 }
  0x20   :  { %v1233_v12 = vor.u32 %v1429_v10, %v1232_v9  ;;  %v1395_v15 = vld [vmem:[#allocation5 + $0xe4] sm:$0xf0]  ;;  %542 = vmatpush.bf16.msra.mxu1 %v1105_v7  ;;  %v1160_v18 = vld [vmem:[#allocation5 + $0x160] sm:$0xf]  ;;  %v1024_v23 = vld [vmem:[#allocation5 + $0x50] sm:$0xf] }
  0x21   :  { %555 = vmatpush.bf16.msra.mxu2 %v1169_v8  ;;  %v1097_v17 = vor.u32 %v1395_v15, %v1096_v14  ;;  %v1411_v19 = vld [vmem:[#allocation5 + $0x164] sm:$0xf0]  ;;  %v1224_v20 = vld [vmem:[#allocation5 + $0x1e0] sm:$0xf]  ;;  %v1377_v24 = vld [vmem:[#allocation5 + $0x54] sm:$0xf0] }
  0x22   :  { %568 = vmatpush.bf16.msra.mxu3 %v1233_v12  ;;  %v1161_v21 = vor.u32 %v1411_v19, %v1160_v18  ;;  %v1427_v22 = vld [vmem:[#allocation5 + $0x1e4] sm:$0xf0]  ;;  %v1088_v26 = vld [vmem:[#allocation5 + $0xd0] sm:$0xf]  ;;  %v1393_v27 = vld [vmem:[#allocation5 + $0xd4] sm:$0xf0]  ;;  %v1025_v29 = vor.u32 %v1377_v24, %v1024_v23 }
  0x23   :  { %v1225_v25 = vor.u32 %v1427_v22, %v1224_v20  ;;  %v1152_v28 = vld [vmem:[#allocation5 + $0x150] sm:$0xf]  ;;  %530 = vmatpush.bf16.msra.mxu0 %v1033_v16  ;;  %v1409_v30 = vld [vmem:[#allocation5 + $0x154] sm:$0xf0]  ;;  %v1089_v33 = vor.u32 %v1393_v27, %v1088_v26  ;;  %v1016_v35 = vld [vmem:[#allocation5 + $0x40] sm:$0xf] }
  0x24   :  { %v1216_v31 = vld [vmem:[#allocation5 + $0x1d0] sm:$0xf]  ;;  %v1425_v32 = vld [vmem:[#allocation5 + $0x1d4] sm:$0xf0]  ;;  %543 = vmatpush.bf16.msra.mxu1 %v1097_v17  ;;  %v1153_v34 = vor.u32 %v1409_v30, %v1152_v28  ;;  %v1375_v36 = vld [vmem:[#allocation5 + $0x44] sm:$0xf0] }
  0x25   :  { %556 = vmatpush.bf16.msra.mxu2 %v1161_v21  ;;  %v1080_v37 = vld [vmem:[#allocation5 + $0xc0] sm:$0xf]  ;;  %v1217_v38 = vor.u32 %v1425_v32, %v1216_v31  ;;  %v1391_v39 = vld [vmem:[#allocation5 + $0xc4] sm:$0xf0]  ;;  %v1017_v44 = vor.u32 %v1375_v36, %v1016_v35  ;;  %v1008_v47 = vld [vmem:[#allocation5 + $0x30] sm:$0xf] }
  0x26   :  { %569 = vmatpush.bf16.msra.mxu3 %v1225_v25  ;;  %v1144_v40 = vld [vmem:[#allocation5 + $0x140] sm:$0xf]  ;;  %v1407_v41 = vld [vmem:[#allocation5 + $0x144] sm:$0xf0]  ;;  %v1081_v45 = vor.u32 %v1391_v39, %v1080_v37  ;;  %v1373_v48 = vld [vmem:[#allocation5 + $0x34] sm:$0xf0] }
  0x27   :  { %v1208_v42 = vld [vmem:[#allocation5 + $0x1c0] sm:$0xf]  ;;  %v1423_v43 = vld [vmem:[#allocation5 + $0x1c4] sm:$0xf0]  ;;  %531 = vmatpush.bf16.msra.mxu0 %v1025_v29  ;;  %v1145_v46 = vor.u32 %v1407_v41, %v1144_v40  ;;  %v1072_v49 = vld [vmem:[#allocation5 + $0xb0] sm:$0xf]  ;;  %v1009_v56 = vor.u32 %v1373_v48, %v1008_v47 }
  0x28   :  { %544 = vmatpush.bf16.msra.mxu1 %v1089_v33  ;;  %v1209_v50 = vor.u32 %v1423_v43, %v1208_v42  ;;  %v1389_v51 = vld [vmem:[#allocation5 + $0xb4] sm:$0xf0]  ;;  %v1136_v52 = vld [vmem:[#allocation5 + $0x130] sm:$0xf]  ;;  %v1000_v59 = vld [vmem:[#allocation5 + $0x20] sm:$0xf] }
  0x29   :  { %557 = vmatpush.bf16.msra.mxu2 %v1153_v34  ;;  %v1405_v53 = vld [vmem:[#allocation5 + $0x134] sm:$0xf0]  ;;  %v1200_v54 = vld [vmem:[#allocation5 + $0x1b0] sm:$0xf]  ;;  %v1073_v57 = vor.u32 %v1389_v51, %v1072_v49  ;;  %v1371_v60 = vld [vmem:[#allocation5 + $0x24] sm:$0xf0] }
  0x2a   :  { %570 = vmatpush.bf16.msra.mxu3 %v1217_v38  ;;  %v1421_v55 = vld [vmem:[#allocation5 + $0x1b4] sm:$0xf0]  ;;  %v1137_v58 = vor.u32 %v1405_v53, %v1136_v52  ;;  %v1064_v61 = vld [vmem:[#allocation5 + $0xa0] sm:$0xf]  ;;  %v1387_v63 = vld [vmem:[#allocation5 + $0xa4] sm:$0xf0]  ;;  %v1001_v4 = vor.u32 %v1371_v60, %v1000_v59 }
  0x2b   :  { %532 = vmatpush.bf16.msra.mxu0 %v1017_v44  ;;  %v1201_v62 = vor.u32 %v1421_v55, %v1200_v54  ;;  %v1128_v0 = vld [vmem:[#allocation5 + $0x120] sm:$0xf]  ;;  %v1403_v1 = vld [vmem:[#allocation5 + $0x124] sm:$0xf0]  ;;  %v1065_v5 = vor.u32 %v1387_v63, %v1064_v61  ;;  %v992_v7 = vld [vmem:[#allocation5 + $0x10] sm:$0xf] }
  0x2c   :  { %545 = vmatpush.bf16.msra.mxu1 %v1081_v45  ;;  %v1192_v2 = vld [vmem:[#allocation5 + $0x1a0] sm:$0xf]  ;;  %v1419_v3 = vld [vmem:[#allocation5 + $0x1a4] sm:$0xf0]  ;;  %v1129_v6 = vor.u32 %v1403_v1, %v1128_v0  ;;  %v1369_v8 = vld [vmem:[#allocation5 + $0x14] sm:$0xf0] }
  0x2d   :  { %558 = vmatpush.bf16.msra.mxu2 %v1145_v46  ;;  %v1056_v9 = vld [vmem:[#allocation5 + $0x90] sm:$0xf]  ;;  %v1193_v10 = vor.u32 %v1419_v3, %v1192_v2  ;;  %v1385_v11 = vld [vmem:[#allocation5 + $0x94] sm:$0xf0]  ;;  %v993_v16 = vor.u32 %v1369_v8, %v992_v7  ;;  %v984_v17 = vld [vmem:[#allocation5] sm:$0xf] }
  0x2e   :  { %571 = vmatpush.bf16.msra.mxu3 %v1209_v50  ;;  %v1120_v12 = vld [vmem:[#allocation5 + $0x110] sm:$0xf]  ;;  %v1401_v13 = vld [vmem:[#allocation5 + $0x114] sm:$0xf0]  ;;  %v1367_v18 = vld [vmem:[#allocation5 + $0x4] sm:$0xf0]  ;;  %v1057_v20 = vor.u32 %v1385_v11, %v1056_v9 }
  0x2f   :  { %533 = vmatpush.bf16.msra.mxu0 %v1009_v56  ;;  %v1184_v14 = vld [vmem:[#allocation5 + $0x190] sm:$0xf]  ;;  %v1417_v15 = vld [vmem:[#allocation5 + $0x194] sm:$0xf0]  ;;  %v1048_v19 = vld [vmem:[#allocation5 + $0x80] sm:$0xf]  ;;  %v1121_v21 = vor.u32 %v1401_v13, %v1120_v12  ;;  %v985_v32 = vor.u32 %v1367_v18, %v984_v17 }
  0x30   :  { %546 = vmatpush.bf16.msra.mxu1 %v1073_v57  ;;  %v1383_v22 = vld [vmem:[#allocation5 + $0x84] sm:$0xf0]  ;;  %v1112_v23 = vld [vmem:[#allocation5 + $0x100] sm:$0xf]  ;;  %v1185_v25 = vor.u32 %v1417_v15, %v1184_v14  ;;  %v1380_v28 = vld [vmem:[#allocation5 + $0x74] sm:$0xf] }
  0x31   :  { %559 = vmatpush.bf16.msra.mxu2 %v1137_v58  ;;  %v1399_v24 = vld [vmem:[#allocation5 + $0x104] sm:$0xf0]  ;;  %v1176_v26 = vld [vmem:[#allocation5 + $0x180] sm:$0xf]  ;;  %v1042_v29 = vld [vmem:[#allocation5 + $0x78] sm:$0xf0]  ;;  %v1049_v37 = vor.u32 %v1383_v22, %v1048_v19 }
  0x32   :  { %572 = vmatpush.bf16.msra.mxu3 %v1201_v62  ;;  %v1415_v27 = vld [vmem:[#allocation5 + $0x184] sm:$0xf0]  ;;  %v1396_v30 = vld [vmem:[#allocation5 + $0xf4] sm:$0xf]  ;;  %v124_v31 = vld [vmem:[#allocation2 + $0x8] sm:$0xff]  ;;  %v1113_v38 = vor.u32 %v1399_v24, %v1112_v23  ;;  %v1045_v43 = vor.u32 %v1380_v28, %v1042_v29  ;;  %s1664_s21 = smov [#allocation13]  }
  0x33   :  { %534 = vmatpush.bf16.msra.mxu0 %v1001_v4  ;;  %v1106_v33 = vld [vmem:[#allocation5 + $0xf8] sm:$0xf0]  ;;  %v1412_v34 = vld [vmem:[#allocation5 + $0x174] sm:$0xf]  ;;  %v199_v36 = vunpack.c.l.b16 %v124_v31  ;;  %v200_v41 = vunpack.c.h.b16 %v124_v31  ;;  %v1177_v42 = vor.u32 %v1415_v27, %v1176_v26  ;;  %v1378_v47 = vld [vmem:[#allocation5 + $0x64] sm:$0xf] }
  0x34   :  { %547 = vmatpush.bf16.msra.mxu1 %v1065_v5  ;;  %v1170_v35 = vld [vmem:[#allocation5 + $0x178] sm:$0xf0]  ;;  %v1428_v39 = vld [vmem:[#allocation5 + $0x1f4] sm:$0xf]  ;;  %v1109_v45 = vor.u32 %v1396_v30, %v1106_v33  ;;  %v1034_v48 = vld [vmem:[#allocation5 + $0x68] sm:$0xf0] }
  0x35   :  { %560 = vmatpush.bf16.msra.mxu2 %v1129_v6  ;;  %v1234_v40 = vld [vmem:[#allocation5 + $0x1f8] sm:$0xf0]  ;;  %v123_v44 = vld [vmem:[#allocation2] sm:$0xff]  ;;  %v1173_v46 = vor.u32 %v1412_v34, %v1170_v35  ;;  %v1394_v49 = vld [vmem:[#allocation5 + $0xe4] sm:$0xf]  ;;  %v1733_v56 = vpack.c.b16 %v199_v36, %v199_v36  ;;  %v1737_v60 = vpack.c.b16 %v200_v41, %v200_v41  ;;  %v1037_v61 = vor.u32 %v1378_v47, %v1034_v48  ;;  %s967_s22 = sshll.u32 %s1664_s21, 4  ;;  %s968_s22 = int_to_ptr.vmem [resolvable:$true] %s967_s22 }
  0x36   :  { %573 = vmatpush.bf16.msra.mxu3 %v1193_v10  ;;  %v197_v50 = vunpack.c.l.b16 %v123_v44  ;;  %v198_v51 = vunpack.c.h.b16 %v123_v44  ;;  %v1237_v52 = vor.u32 %v1428_v39, %v1234_v40  ;;  %v1098_v53 = vld [vmem:[#allocation5 + $0xe8] sm:$0xf0]  ;;  %v1410_v54 = vld [vmem:[#allocation5 + $0x164] sm:$0xf]  ;;  %v1376_v1 = vld [vmem:[#allocation5 + $0x54] sm:$0xf] }
  0x37   :  { %535 = vmatpush.bf16.msra.mxu0 %v993_v16  ;;  %v1162_v55 = vld [vmem:[#allocation5 + $0x168] sm:$0xf0]  ;;  %v1426_v57 = vld [vmem:[#allocation5 + $0x1e4] sm:$0xf]  ;;  %v1101_v63 = vor.u32 %v1394_v49, %v1098_v53  ;;  %v1026_v2 = vld [vmem:[#allocation5 + $0x58] sm:$0xf0] }
  0x38   :  { %548 = vmatpush.bf16.msra.mxu1 %v1057_v20  ;;  %v1226_v58 = vld [vmem:[#allocation5 + $0x1e8] sm:$0xf0]  ;;  %v1735_v59 = vpack.c.b16 %v197_v50, %v197_v50  ;;  %v1739_v62 = vpack.c.b16 %v198_v51, %v198_v51  ;;  %v1165_v0 = vor.u32 %v1410_v54, %v1162_v55  ;;  %v1392_v3 = vld [vmem:[#allocation5 + $0xd4] sm:$0xf]  ;;  %v1090_v5 = vld [vmem:[#allocation5 + $0xd8] sm:$0xf0]  ;;  %v1029_v10 = vor.u32 %v1376_v1, %v1026_v2 }
  0x39   :  { %561 = vmatpush.bf16.msra.mxu2 %v1121_v21  ;;  %v1229_v4 = vor.u32 %v1426_v57, %v1226_v58  ;;  %v1408_v6 = vld [vmem:[#allocation5 + $0x154] sm:$0xf]  ;;  %v1154_v7 = vld [vmem:[#allocation5 + $0x158] sm:$0xf0]  ;;  %v1093_v11 = vor.u32 %v1392_v3, %v1090_v5  ;;  %v1374_v13 = vld [vmem:[#allocation5 + $0x44] sm:$0xf] }
  0x3a   :  { %574 = vmatpush.bf16.msra.mxu3 %v1185_v25  ;;  %v1424_v8 = vld [vmem:[#allocation5 + $0x1d4] sm:$0xf]  ;;  %v1218_v9 = vld [vmem:[#allocation5 + $0x1d8] sm:$0xf0]  ;;  %v1157_v12 = vor.u32 %v1408_v6, %v1154_v7  ;;  %v1018_v14 = vld [vmem:[#allocation5 + $0x48] sm:$0xf0] }
  0x3b   :  { %536 = vmatpush.bf16.msra.mxu0 %v985_v32  ;;  %v1390_v15 = vld [vmem:[#allocation5 + $0xc4] sm:$0xf]  ;;  %v1221_v16 = vor.u32 %v1424_v8, %v1218_v9  ;;  %v1082_v17 = vld [vmem:[#allocation5 + $0xc8] sm:$0xf0]  ;;  %v1021_v22 = vor.u32 %v1374_v13, %v1018_v14  ;;  %v1372_v25 = vld [vmem:[#allocation5 + $0x34] sm:$0xf] }
  0x3c   :  { %549 = vmatpush.bf16.msra.mxu1 %v1049_v37  ;;  %v1406_v18 = vld [vmem:[#allocation5 + $0x144] sm:$0xf]  ;;  %v1146_v19 = vld [vmem:[#allocation5 + $0x148] sm:$0xf0]  ;;  %v1085_v23 = vor.u32 %v1390_v15, %v1082_v17  ;;  %v1010_v26 = vld [vmem:[#allocation5 + $0x38] sm:$0xf0] }
  0x3d   :  { %562 = vmatpush.bf16.msra.mxu2 %v1113_v38  ;;  %v1422_v20 = vld [vmem:[#allocation5 + $0x1c4] sm:$0xf]  ;;  %v1210_v21 = vld [vmem:[#allocation5 + $0x1c8] sm:$0xf0]  ;;  %v1149_v24 = vor.u32 %v1406_v18, %v1146_v19  ;;  %v1388_v27 = vld [vmem:[#allocation5 + $0xb4] sm:$0xf]  ;;  %v1013_v34 = vor.u32 %v1372_v25, %v1010_v26 }
  0x3e   :  { %575 = vmatpush.bf16.msra.mxu3 %v1177_v42  ;;  %537 = vmatmul.bf16.vlgmr.msra.gmra.mxu0 %v1735_v59  ;;  %v1213_v28 = vor.u32 %v1422_v20, %v1210_v21  ;;  %v1074_v29 = vld [vmem:[#allocation5 + $0xb8] sm:$0xf0]  ;;  %v1404_v30 = vld [vmem:[#allocation5 + $0x134] sm:$0xf]  ;;  %v1370_v37 = vld [vmem:[#allocation5 + $0x24] sm:$0xf] }
  0x3f   :  { %581 = vmatpush.bf16.msrb.mxu0 %v1045_v43  ;;  %550 = vmatmul.bf16.vlgmr.msra.gmra.mxu1 %v1739_v62  ;;  %v1138_v31 = vld [vmem:[#allocation5 + $0x138] sm:$0xf0]  ;;  %v1420_v32 = vld [vmem:[#allocation5 + $0x1b4] sm:$0xf]  ;;  %v1077_v35 = vor.u32 %v1388_v27, %v1074_v29  ;;  %v1002_v38 = vld [vmem:[#allocation5 + $0x28] sm:$0xf0] }
  0x40   :  { %594 = vmatpush.bf16.msrb.mxu1 %v1109_v45  ;;  %563 = vmatmul.bf16.vlgmr.msra.gmra.mxu2 %v1733_v56  ;;  %v1202_v33 = vld [vmem:[#allocation5 + $0x1b8] sm:$0xf0]  ;;  %v1141_v36 = vor.u32 %v1404_v30, %v1138_v31  ;;  %v1386_v39 = vld [vmem:[#allocation5 + $0xa4] sm:$0xf]  ;;  %v1066_v41 = vld [vmem:[#allocation5 + $0xa8] sm:$0xf0] }
  0x41   :  { %607 = vmatpush.bf16.msrb.mxu2 %v1173_v46  ;;  %576 = vmatmul.bf16.vlgmr.msra.gmra.mxu3 %v1737_v60  ;;  %v1205_v40 = vor.u32 %v1420_v32, %v1202_v33  ;;  %v1402_v42 = vld [vmem:[#allocation5 + $0x124] sm:$0xf]  ;;  %v1130_v43 = vld [vmem:[#allocation5 + $0x128] sm:$0xf0]  ;;  %v1005_v46 = vor.u32 %v1370_v37, %v1002_v38  ;;  %v1069_v47 = vor.u32 %v1386_v39, %v1066_v41  ;;  %v1368_v49 = vld [vmem:[#allocation5 + $0x14] sm:$0xf] }
  0x42   :  { %620 = vmatpush.bf16.msrb.mxu3 %v1237_v52  ;;  %v1418_v44 = vld [vmem:[#allocation5 + $0x1a4] sm:$0xf]  ;;  %v1194_v45 = vld [vmem:[#allocation5 + $0x1a8] sm:$0xf0]  ;;  %v1133_v48 = vor.u32 %v1402_v42, %v1130_v43  ;;  %v994_v50 = vld [vmem:[#allocation5 + $0x18] sm:$0xf0] }
  0x43   :  { %582 = vmatpush.bf16.msrb.mxu0 %v1037_v61  ;;  %v1384_v51 = vld [vmem:[#allocation5 + $0x94] sm:$0xf]  ;;  %v1197_v52 = vor.u32 %v1418_v44, %v1194_v45  ;;  %v1058_v53 = vld [vmem:[#allocation5 + $0x98] sm:$0xf0]  ;;  %v997_v61 = vor.u32 %v1368_v49, %v994_v50  ;;  %v1366_v1 = vld [vmem:[#allocation5 + $0x4] sm:$0xf] }
  0x44   :  { %595 = vmatpush.bf16.msrb.mxu1 %v1101_v63  ;;  %v1400_v54 = vld [vmem:[#allocation5 + $0x114] sm:$0xf]  ;;  %v1122_v55 = vld [vmem:[#allocation5 + $0x118] sm:$0xf0]  ;;  %v1061_v63 = vor.u32 %v1384_v51, %v1058_v53  ;;  %v986_v2 = vld [vmem:[#allocation5 + $0x8] sm:$0xf0] }
  0x45   :  { %608 = vmatpush.bf16.msrb.mxu2 %v1165_v0  ;;  %v1416_v57 = vld [vmem:[#allocation5 + $0x194] sm:$0xf]  ;;  %v1186_v58 = vld [vmem:[#allocation5 + $0x198] sm:$0xf0]  ;;  %v1125_v0 = vor.u32 %v1400_v54, %v1122_v55  ;;  %v1382_v3 = vld [vmem:[#allocation5 + $0x84] sm:$0xf] }
  0x46   :  { %621 = vmatpush.bf16.msrb.mxu3 %v1229_v4  ;;  %v1189_v4 = vor.u32 %v1416_v57, %v1186_v58  ;;  %v1050_v5 = vld [vmem:[#allocation5 + $0x88] sm:$0xf0]  ;;  %v1398_v6 = vld [vmem:[#allocation5 + $0x104] sm:$0xf]  ;;  %v1437_v14 = vld [vmem:[#allocation8 + $0x38] sm:$0xff]  ;;  %s969_s24 = sshll.u32 %s1770_s9, 4  ;;  %s970_s24 = int_to_ptr.hbm [resolvable:$true] %s969_s24 }
  0x47   :  { %583 = vmatpush.bf16.msrb.mxu0 %v1029_v10  ;;  %v1114_v7 = vld [vmem:[#allocation5 + $0x108] sm:$0xf0]  ;;  %v1414_v8 = vld [vmem:[#allocation5 + $0x184] sm:$0xf]  ;;  %v989_v10 = vor.u32 %v1366_v1, %v986_v2  ;;  %v1436_v15 = vld [vmem:[#allocation8 + $0x30] sm:$0xff] }
  0x48   :  { %596 = vmatpush.bf16.msrb.mxu1 %v1093_v11  ;;  %v1178_v9 = vld [vmem:[#allocation5 + $0x188] sm:$0xf0]  ;;  %v1053_v11 = vor.u32 %v1382_v3, %v1050_v5  ;;  %v1434_v17 = vld [vmem:[#allocation8 + $0x20] sm:$0xff]  ;;  %v1433_v18 = vld [vmem:[#allocation8 + $0x18] sm:$0xff] }
  0x49   :  { %609 = vmatpush.bf16.msrb.mxu2 %v1157_v12  ;;  %v1117_v12 = vor.u32 %v1398_v6, %v1114_v7  ;;  %v1181_v13 = vor.u32 %v1414_v8, %v1178_v9  ;;  %v1432_v19 = vld [vmem:[#allocation8 + $0x10] sm:$0xff]  ;;  %v1431_v20 = vld [vmem:[#allocation8 + $0x8] sm:$0xff]  ;;  %v1445_v21 = vld [vmem:[#allocation8 + $0x78] sm:$0xff] }
  0x4a   :  { %622 = vmatpush.bf16.msrb.mxu3 %v1221_v16  ;;  %v1435_v16 = vld [vmem:[#allocation8 + $0x28] sm:$0xff]  ;;  %v1440_v25 = vld [vmem:[#allocation8 + $0x50] sm:$0xff]  ;;  %v1453_v58 = vld [vmem:[#allocation10 + $0x38] sm:$0xff] }
  0x4b   :  { %584 = vmatpush.bf16.msrb.mxu0 %v1021_v22  ;;  %v1444_v22 = vld [vmem:[#allocation8 + $0x70] sm:$0xff]  ;;  %v1439_v30 = vld [vmem:[#allocation8 + $0x48] sm:$0xff]  ;;  %v1449_v1 = vld [vmem:[#allocation10 + $0x18] sm:$0xff] }
  0x4c   :  { %597 = vmatpush.bf16.msrb.mxu1 %v1085_v23  ;;  %v1441_v23 = vld [vmem:[#allocation8 + $0x58] sm:$0xff]  ;;  %v1448_v2 = vld [vmem:[#allocation10 + $0x10] sm:$0xff]  ;;  %v1447_v3 = vld [vmem:[#allocation10 + $0x8] sm:$0xff] }
  0x4d   :  { %610 = vmatpush.bf16.msrb.mxu2 %v1149_v24  ;;  %v1446_v5 = vld [vmem:[#allocation10] sm:$0xff]  ;;  %v1461_v6 = vld [vmem:[#allocation11 + $0x38] sm:$0xff]  ;;  %v1460_v8 = vld [vmem:[#allocation11 + $0x30] sm:$0xff] }
  0x4e   :  { %623 = vmatpush.bf16.msrb.mxu3 %v1213_v28  ;;  %v1459_v9 = vld [vmem:[#allocation11 + $0x28] sm:$0xff] }
  0x4f   :  { %585 = vmatpush.bf16.msrb.mxu0 %v1013_v34 }
  0x50   :  { %598 = vmatpush.bf16.msrb.mxu1 %v1077_v35 }
  0x51   :  { %611 = vmatpush.bf16.msrb.mxu2 %v1141_v36  ;;  %v1438_v36 = vld [vmem:[#allocation8 + $0x40] sm:$0xff] }
  0x52   :  { %624 = vmatpush.bf16.msrb.mxu3 %v1205_v40 }
  0x53   :  { %586 = vmatpush.bf16.msrb.mxu0 %v1005_v46 }
  0x54   :  { %599 = vmatpush.bf16.msrb.mxu1 %v1069_v47 }
  0x55   :  { %612 = vmatpush.bf16.msrb.mxu2 %v1133_v48 }
  0x56   :  { %625 = vmatpush.bf16.msrb.mxu3 %v1197_v52 }
  0x57   :  { %587 = vmatpush.bf16.msrb.mxu0 %v997_v61  ;;  %v1452_v61 = vld [vmem:[#allocation10 + $0x30] sm:$0xff] }
  0x58   :  { %600 = vmatpush.bf16.msrb.mxu1 %v1061_v63  ;;  %v1451_v63 = vld [vmem:[#allocation10 + $0x28] sm:$0xff] }
  0x59   :  { %613 = vmatpush.bf16.msrb.mxu2 %v1125_v0  ;;  %v1450_v0 = vld [vmem:[#allocation10 + $0x20] sm:$0xff] }
  0x5a   :  { %626 = vmatpush.bf16.msrb.mxu3 %v1189_v4 }
  0x5b   :  { %588 = vmatpush.bf16.msrb.mxu0 %v989_v10  ;;  %v1458_v10 = vld [vmem:[#allocation11 + $0x20] sm:$0xff] }
  0x5c   :  { %601 = vmatpush.bf16.msrb.mxu1 %v1053_v11  ;;  %v1457_v11 = vld [vmem:[#allocation11 + $0x18] sm:$0xff] }
  0x5d   :  { %614 = vmatpush.bf16.msrb.mxu2 %v1117_v12  ;;  %v1456_v12 = vld [vmem:[#allocation11 + $0x10] sm:$0xff] }
  0x5e   :  { %627 = vmatpush.bf16.msrb.mxu3 %v1181_v13  ;;  %589 = vmatmul.bf16.vlgmr.msrb.gmra.mxu0 %v1735_v59  ;;  %v1430_v59 = vld [vmem:[#allocation8] sm:$0xff]  ;;  %v1473_v13 = vld [vmem:[%s1765_s4] ss:$0 sm:$0xff] }
  0x5f   :  { %769 = vmatpush.bf16.msra.mxu0 %v1437_v14  ;;  %602 = vmatmul.bf16.vlgmr.msrb.gmra.mxu1 %v1739_v62  ;;  %v189_v62 = vld [vmem:[#allocation7] sm:$0x3] }
  0x60   :  { %615 = vmatmul.bf16.vlgmr.msrb.gmra.mxu2 %v1733_v56  ;;  %782 = vmatpush.bf16.msra.mxu1 %v1445_v21  ;;  %v1443_v56 = vld [vmem:[#allocation8 + $0x68] sm:$0xff]  ;;  %v191_v24 = vperm.slane %v189_v62, 0  ;;  %v192_v42 = vperm.slane %v189_v62, 1  ;;  %v1454_v21 = vld [vmem:[#allocation11] sm:$0xff] }
  0x61   :  { %628 = vmatmul.bf16.vlgmr.msrb.gmra.mxu3 %v1737_v60  ;;  %v1442_v60 = vld [vmem:[#allocation8 + $0x60] sm:$0xff]  ;;  %865 = vmatpush.bf16.msra.mxu2 %v1453_v58 }
  0x62   :  { %948 = vmatpush.bf16.msra.mxu3 %v1461_v6 }
  0x63   :  { %770 = vmatpush.bf16.msra.mxu0 %v1436_v15 }
  0x64   :  { %783 = vmatpush.bf16.msra.mxu1 %v1444_v22 }
  0x65   :  { %866 = vmatpush.bf16.msra.mxu2 %v1452_v61 }
  0x66   :  { %949 = vmatpush.bf16.msra.mxu3 %v1460_v8 }
  0x67   :  { %771 = vmatpush.bf16.msra.mxu0 %v1435_v16 }
  0x68   :  { %784 = vmatpush.bf16.msra.mxu1 %v1443_v56 }
  0x69   :  { %867 = vmatpush.bf16.msra.mxu2 %v1451_v63 }
  0x6a   :  { %950 = vmatpush.bf16.msra.mxu3 %v1459_v9 }
  0x6b   :  { %772 = vmatpush.bf16.msra.mxu0 %v1434_v17 }
  0x6c   :  { %785 = vmatpush.bf16.msra.mxu1 %v1442_v60 }
  0x6d   :  { %868 = vmatpush.bf16.msra.mxu2 %v1450_v0 }
  0x6e   :  { %951 = vmatpush.bf16.msra.mxu3 %v1458_v10 }
  0x6f   :  { %773 = vmatpush.bf16.msra.mxu0 %v1433_v18 }
  0x70   :  { %786 = vmatpush.bf16.msra.mxu1 %v1441_v23 }
  0x71   :  { %869 = vmatpush.bf16.msra.mxu2 %v1449_v1 }
  0x72   :  { %952 = vmatpush.bf16.msra.mxu3 %v1457_v11 }
  0x73   :  { %774 = vmatpush.bf16.msra.mxu0 %v1432_v19 }
  0x74   :  { %787 = vmatpush.bf16.msra.mxu1 %v1440_v25 }
  0x75   :  { %870 = vmatpush.bf16.msra.mxu2 %v1448_v2 }
  0x76   :  { %953 = vmatpush.bf16.msra.mxu3 %v1456_v12 }
  0x77   :  { %775 = vmatpush.bf16.msra.mxu0 %v1431_v20  ;;  %v1455_v20 = vld [vmem:[#allocation11 + $0x8] sm:$0xff] }
  0x78   :  { %788 = vmatpush.bf16.msra.mxu1 %v1439_v30 }
  0x79   :  { %871 = vmatpush.bf16.msra.mxu2 %v1447_v3 }
  0x7a   :  { %954 = vmatpush.bf16.msra.mxu3 %v1455_v20 }
  0x7b   :  { %776 = vmatpush.bf16.msra.mxu0 %v1430_v59  ;;  %v1474_v59 = vld [vmem:[%s1767_s6] ss:$0 sm:$0xff] }
  0x7c   :  { %789 = vmatpush.bf16.msra.mxu1 %v1438_v36 }
  0x7d   :  { %872 = vmatpush.bf16.msra.mxu2 %v1446_v5 }
  0x7e   :  { %955 = vmatpush.bf16.msra.mxu3 %v1454_v21 }
  0xbb   :  { %v538_v26 = vpop.f32.mrf.mxu0 }
  0xbc   :  { %v539_v27 = vadd.f32 %v538_v26, %v191_v24  ;;  %v551_v28 = vpop.f32.mrf.mxu1  ;;  %v1475_v24 = vld [vmem:[%s1769_s8] ss:$0 sm:$0xff] }
  0xbe   :  { %v552_v29 = vadd.f32 %v551_v28, %v539_v27 }
  0xc3   :  { %v564_v31 = vpop.f32.mrf.mxu2  ;;  %v540_v35 = vpop.f32.mrf.mxu0 }
  0xc4   :  { %v565_v32 = vadd.f32 %v564_v31, %v552_v29  ;;  %v577_v33 = vpop.f32.mrf.mxu3  ;;  %v553_v37 = vpop.f32.mrf.mxu1 }
  0xc6   :  { %v578_v34 = vadd.f32 %v577_v33, %v565_v32 }
  0xc8   :  { %v633_v38 = vmax.f32 %v578_v34, 0.0 }
  0xca   :  { %v635_v39 = vpack.c.bf16 %v633_v38, %v633_v38 }
  0xcb   :  { %v566_v40 = vpop.f32.mrf.mxu2 }
  0xcc   :  { %777 = vmatmul.bf16.vlgmr.msra.gmra.mxu0 %v635_v39  ;;  %v579_v41 = vpop.f32.mrf.mxu3 }
  0xdb   :  { %v590_v43 = vpop.f32.mrf.mxu0 }
  0xdc   :  { %v591_v44 = vadd.f32 %v590_v43, %v192_v42  ;;  %v603_v45 = vpop.f32.mrf.mxu1 }
  0xde   :  { %v604_v46 = vadd.f32 %v603_v45, %v591_v44 }
  0xe3   :  { %v616_v47 = vpop.f32.mrf.mxu2  ;;  %v592_v50 = vpop.f32.mrf.mxu0 }
  0xe4   :  { %v617_v48 = vadd.f32 %v616_v47, %v604_v46  ;;  %v629_v49 = vpop.f32.mrf.mxu3  ;;  %v605_v51 = vpop.f32.mrf.mxu1 }
  0xe6   :  { %v630_v52 = vadd.f32 %v629_v49, %v617_v48 }
  0xe8   :  { %v634_v53 = vmax.f32 %v630_v52, 0.0 }
  0xea   :  { %v636_v54 = vpack.c.bf16 %v634_v53, %v634_v53 }
  0xeb   :  { %v618_v55 = vpop.f32.mrf.mxu2 }
  0xec   :  { %v631_v57 = vpop.f32.mrf.mxu3  ;;  %790 = vmatmul.bf16.vlgmr.msra.gmra.mxu1 %v636_v54 }
 0x149   :  { %v778_v4 = vpop.f32.mrf.mxu0 }
 0x14a   :  { %v779_v14 = vadd.f32 %v1473_v13, %v778_v4 }
 0x151   :  { %v780_v7 = vpop.f32.mrf.mxu0 }
 0x169   :  { %v791_v15 = vpop.f32.mrf.mxu1 }
 0x16a   :  { %v792_v16 = vadd.f32 %v791_v15, %v779_v14 }
 0x16c   :  { %v795_v17 = vmax.f32 %v792_v16, 0.0 }
 0x16e   :  { %v796_v18 = vpack.c.bf16 %v795_v17, %v795_v17 }
 0x170   :  { %873 = vmatmul.bf16.vlgmr.msra.gmra.mxu2 %v796_v18 }
 0x171   :  { %v793_v19 = vpop.f32.mrf.mxu1 }
 0x1f3   :  { %v874_v22 = vpop.f32.mrf.mxu2 }
 0x1f4   :  { %v875_v56 = vadd.f32 %v1474_v59, %v874_v22 }
 0x1f6   :  { %v878_v60 = vmax.f32 %v875_v56, 0.0 }
 0x1f8   :  { %v879_v62 = vpack.c.bf16 %v878_v60, %v878_v60 }
 0x1fa   :  { %956 = vmatmul.bf16.vlgmr.msra.gmra.mxu3 %v879_v62 }
 0x1fb   :  { %v876_v23 = vpop.f32.mrf.mxu2 }
 0x27d   :  { %v957_v25 = vpop.f32.mrf.mxu3 }
 0x27e   :  { %v958_v26 = vadd.f32 %v1475_v24, %v957_v25 }
 0x280   :  { %961 = vst [vmem:[#allocation13] sm:$0xff] %v958_v26 }
 0x281   :  { %972 = dma.vmem_to_hbm [thread:$0]  %s968_s22, 128, %s970_s24, [#allocation4]  }
 0x285   :  { %v959_v27 = vpop.f32.mrf.mxu3 }
 0x286   :  { %1652 = dma.done.wait [#allocation4], 128  }
 0x287   :  { %1653 = vsyncadd [#allocation4], 4294967168 }
 0x288   :  { %977 = vsyncpa [#allocation3], 1 }
 0x289   :  { %978 = vsyncpa [#allocation6], 1 }
 0x28a   :  { %979 = vsyncpa [#allocation9], 1 }
 0x28b   :  { %980 = vsyncpa [#allocation12], 1 }
 0x28c   :  { %981 = vsyncpa [#allocation4], 1 }

</bundles_post_ra>
